<compile_context>
chip_gen: v5e
topology: v5e:2x2
jax: 0.10.0
libtpu: 0.0.40
codegen_flags: <defaults>
</compile_context>

<pallas_src>
import functools

import jax
import jax.numpy as jnp
from jax import lax
from jax.experimental import pallas as pl
from jax.experimental.pallas import tpu as pltpu

_SUBLANE = 8
_LANE = 128


def _round_up(v, m):
    return -(-v // m) * m


def _rot_left(v, amt):
    """result[..., j] = v[..., (j + amt) % n]   (== jnp.roll(v, -amt, axis=-1))."""
    axis = v.ndim - 1
    n = v.shape[axis]
    amt = amt % n
    if amt == 0:
        return v
    return pltpu.roll(v, n - amt, axis=axis)


def _window_reduce(v, k, stride, op):
    """w[..., j] = op(v[..., j], v[..., j+stride], ..., v[..., j+(k-1)*stride]).

    Exact (non-overlapping) binary decomposition, so it is valid for both max
    and sum.  Lanes whose window would wrap hold garbage and are never
    selected.
    """
    acc = None
    covered = 0
    span = 1
    blk = v
    kk = k
    while kk:
        if kk & 1:
            if acc is None:
                acc = blk
            else:
                acc = op(acc, _rot_left(blk, covered * stride))
            covered += span
        kk >>= 1
        if kk:
            blk = op(blk, _rot_left(blk, span * stride))
            span *= 2
    return acc


def _sdn_pool_kernel(alpha_ref, x_ref, o_ref, *, w, kh, kw, oh, ow,
                     gr, n_chunks, dense_out):
    """alpha_ref: (1,) f32 SMEM.  x_ref: (TR, H*W) VMEM.
    o_ref: (1, TR*oh*ow/128, 128) [dense_out] or (TR, oh*ow) [fallback]."""
    inv_k = 1.0 / float(kh * kw)
    alpha = alpha_ref[0]
    a_max = alpha                    # weight of the max-pool branch
    a_avg = (1.0 - alpha) * inv_k    # weight applied directly to the window sum

    # Lane position (within one pooling row of the block) that holds each
    # window's reduction result = the window's first element.
    positions = [oh_i * kh * w + ow_i * kw
                 for oh_i in range(oh) for ow_i in range(ow)]

    def chunk(g, carry):
        r0 = pl.multiple_of(g * gr, gr)
        xg = x_ref[pl.ds(r0, gr), :].astype(jnp.float32)          # (gr, H*W)

        # kw (adjacent lanes) then kh (stride-W lanes) window reductions,
        # fully lane-dense; only the selected lanes are meaningful.
        mx = _window_reduce(xg, kw, 1, jnp.maximum)
        mx = _window_reduce(mx, kh, w, jnp.maximum)
        sm = _window_reduce(xg, kw, 1, jnp.add)
        sm = _window_reduce(sm, kh, w, jnp.add)

        # alpha * max + (1 - alpha) * avg, computed on the dense chunk.
        mixed = sm * a_avg + mx * a_max                            # (gr, H*W)

        # Gather the oh*ow per-window results of every row.
        sel = jnp.concatenate([mixed[:, p:p + 1] for p in positions],
                              axis=1)                              # (gr, oh*ow)

        if dense_out:
            # Pack the gr rows into one dense 128-lane output row
            # (gr * oh*ow == 128 by construction) using only sublane slices
            # and a lane concat -- no sublane->lane reshape needed.
            if gr > 1:
                packed = jnp.concatenate(
                    [sel[r:r + 1, :] for r in range(gr)], axis=1)  # (1, 128)
            else:
                packed = sel
            o_ref[0, pl.ds(g, 1), :] = packed.astype(o_ref.dtype)
        else:
            o_ref[pl.ds(r0, gr), :] = sel.astype(o_ref.dtype)
        return carry

    lax.fori_loop(0, n_chunks, chunk, 0)


@functools.partial(jax.jit, static_argnames=("target_size",))
def sdn_pool(x, alpha, target_size):
    """x: (N, C, H, W), alpha: (1,) float32, target_size: int or (oh, ow)."""
    if isinstance(target_size, int):
        target_size = (target_size, target_size)
    N, C, H, W = x.shape
    oh, ow = target_size
    assert H % oh == 0 and W % ow == 0, "only divisible adaptive pooling supported"
    kh, kw = H // oh, W // ow
    R = N * C
    HW = H * W
    OW = oh * ow

    alpha = alpha.reshape(1).astype(jnp.float32)
    x2 = x.reshape(R, HW)  # free, memory-order-preserving

    # Lane-dense packed output path: pack 128 // OW pooling rows per output
    # lane row.  Fall back to a plain (TR, OW) output otherwise.
    dense_out = (OW <= 128) and (128 % OW == 0) and (128 // OW <= 16)
    gr = (128 // OW) if dense_out else _SUBLANE      # rows per in-kernel chunk
    align = max(_SUBLANE, gr)

    # Row tile from *useful* bytes; ~4 MiB per buffer (double-buffered ~8 MiB,
    # under the scoped-VMEM defaults on v5e/v6e/v7x).  No minimum-step clamp.
    padded_row_bytes = _round_up(HW, _LANE) * 4
    target_block_bytes = 4 * 1024 * 1024
    tr = max(align, (target_block_bytes // padded_row_bytes) // align * align)
    tr = min(tr, _round_up(R, align))
    nb = pl.cdiv(R, tr)          # ragged last block allowed (rows sliced off)
    n_chunks = tr // gr

    kernel = functools.partial(
        _sdn_pool_kernel, w=W, kh=kh, kw=kw, oh=oh, ow=ow,
        gr=gr, n_chunks=n_chunks, dense_out=dense_out)

    in_specs = [
        pl.BlockSpec(memory_space=pltpu.MemorySpace.SMEM),     # alpha scalar
        pl.BlockSpec((tr, HW), lambda i: (i, 0)),              # pooling rows
    ]
    if dense_out:
        out_rows = (tr * OW) // 128                            # == n_chunks
        out_shape = jax.ShapeDtypeStruct((nb, out_rows, 128), x.dtype)
        out_specs = pl.BlockSpec((1, out_rows, 128), lambda i: (i, 0, 0))
    else:
        out_shape = jax.ShapeDtypeStruct((nb * tr, OW), x.dtype)
        out_specs = pl.BlockSpec((tr, OW), lambda i: (i, 0))

    itemsize = jnp.dtype(x.dtype).itemsize
    cost = pl.CostEstimate(
        flops=2 * N * C * H * W,              # one max-combine + one add per elem
        transcendentals=0,
        bytes_accessed=int(R * HW * itemsize + R * OW * itemsize + 4),
    )

    out = pl.pallas_call(
        kernel,
        out_shape=out_shape,
        grid=(nb,),
        in_specs=in_specs,
        out_specs=out_specs,
        compiler_params=pltpu.CompilerParams(
            dimension_semantics=("parallel",)),
        cost_estimate=cost,
    )(alpha, x2)

    out = out.reshape(nb * tr, OW)[:R]        # drop garbage rows of a ragged tail
    return out.reshape(N, C, oh, ow)


def _reference(x, alpha, target_size):
    N, C, H, W = x.shape
    oh, ow = target_size
    kh, kw = H // oh, W // ow
    xw = x.reshape(N, C, oh, kh, ow, kw)
    mx = xw.max(axis=(3, 5))
    av = xw.mean(axis=(3, 5))
    return alpha[0] * mx + (1.0 - alpha[0]) * av


if __name__ == "__main__":
    key = jax.random.PRNGKey(0)
    kx, ka = jax.random.split(key)

    # Small shapes consistent with the module: NCHW input, target_size = (4, 4).
    N, C, H, W = 2, 4, 16, 16
    target_size = (4, 4)

    x = jax.random.normal(kx, (N, C, H, W), dtype=jnp.float32)
    # nn.Parameter(torch.rand(1)) -> uniform [0, 1) scalar.
    alpha = jax.random.uniform(ka, (1,), dtype=jnp.float32)

    out = sdn_pool(x, alpha, target_size)
    out = jax.block_until_ready(out)

    ref = _reference(x, alpha, target_size)
    assert out.shape == (N, C, target_size[0], target_size[1]), out.shape
    assert jnp.allclose(out, ref, atol=1e-5, rtol=1e-5), float(jnp.abs(out - ref).max())

    print("KERNEL_OK")
</pallas_src>

<mosaic_0001>
module attributes {stable_mosaic.version = 11 : i64} {
  func.func @_sdn_pool_kernel(%arg0: i32, %arg1: memref<1xf32, #tpu.memory_space<smem>>, %arg2: memref<8x256xf32, #tpu.memory_space<vmem>>, %arg3: memref<1x1x128xf32, #tpu.memory_space<vmem>>) attributes {dimension_semantics = [#tpu.dimension_semantics<parallel>], iteration_bounds = array<i64: 1>, scalar_prefetch = 0 : i64, scratch_operands = 0 : i64, tpu.core_type = #tpu.core_type<tc>, window_params = [{transform_indices = @transform_0, window_bounds = array<i64: 1>}, {transform_indices = @transform_1, window_bounds = array<i64: 8, 256>}, {transform_indices = @transform_2, window_bounds = array<i64: 1, 1, 128>}]} {
    %c0 = arith.constant 0 : index
    %0 = memref.load %arg1[%c0] : memref<1xf32, #tpu.memory_space<smem>>
    %cst = arith.constant 1.000000e+00 : f32
    %1 = arith.subf %cst, %0 : f32
    %cst_0 = arith.constant 6.250000e-02 : f32
    %2 = arith.mulf %1, %cst_0 : f32
    %c0_i32 = arith.constant 0 : i32
    %c8_i32 = arith.constant 8 : i32
    %3 = arith.muli %c0_i32, %c8_i32 : i32
    %4 = tpu.assume_multiple %3, 8 : i32
    %5 = arith.index_cast %4 : i32 to index
    %c0_1 = arith.constant 0 : index
    %6 = vector.load %arg2[%5, %c0_1] : memref<8x256xf32, #tpu.memory_space<vmem>>, vector<8x256xf32>
    %c255_i32 = arith.constant 255 : i32
    %7 = tpu.dynamic_rotate %6 by %c255_i32 dim 1 : vector<8x256xf32>, i32 -> vector<8x256xf32>
    %8 = arith.maximumf %6, %7 : vector<8x256xf32>
    %c254_i32 = arith.constant 254 : i32
    %9 = tpu.dynamic_rotate %8 by %c254_i32 dim 1 : vector<8x256xf32>, i32 -> vector<8x256xf32>
    %10 = arith.maximumf %8, %9 : vector<8x256xf32>
    %c240_i32 = arith.constant 240 : i32
    %11 = tpu.dynamic_rotate %10 by %c240_i32 dim 1 : vector<8x256xf32>, i32 -> vector<8x256xf32>
    %12 = arith.maximumf %10, %11 : vector<8x256xf32>
    %c224_i32 = arith.constant 224 : i32
    %13 = tpu.dynamic_rotate %12 by %c224_i32 dim 1 : vector<8x256xf32>, i32 -> vector<8x256xf32>
    %14 = arith.maximumf %12, %13 : vector<8x256xf32>
    %c255_i32_2 = arith.constant 255 : i32
    %15 = tpu.dynamic_rotate %6 by %c255_i32_2 dim 1 : vector<8x256xf32>, i32 -> vector<8x256xf32>
    %16 = arith.addf %6, %15 : vector<8x256xf32>
    %c254_i32_3 = arith.constant 254 : i32
    %17 = tpu.dynamic_rotate %16 by %c254_i32_3 dim 1 : vector<8x256xf32>, i32 -> vector<8x256xf32>
    %18 = arith.addf %16, %17 : vector<8x256xf32>
    %c240_i32_4 = arith.constant 240 : i32
    %19 = tpu.dynamic_rotate %18 by %c240_i32_4 dim 1 : vector<8x256xf32>, i32 -> vector<8x256xf32>
    %20 = arith.addf %18, %19 : vector<8x256xf32>
    %c224_i32_5 = arith.constant 224 : i32
    %21 = tpu.dynamic_rotate %20 by %c224_i32_5 dim 1 : vector<8x256xf32>, i32 -> vector<8x256xf32>
    %22 = arith.addf %20, %21 : vector<8x256xf32>
    %23 = vector.broadcast %2 : f32 to vector<8x256xf32>
    %24 = arith.mulf %22, %23 : vector<8x256xf32>
    %25 = vector.broadcast %0 : f32 to vector<8x256xf32>
    %26 = arith.mulf %14, %25 : vector<8x256xf32>
    %27 = arith.addf %24, %26 : vector<8x256xf32>
    %28 = vector.extract_strided_slice %27 {offsets = [0, 0], sizes = [8, 1], strides = [1, 1]} : vector<8x256xf32> to vector<8x1xf32>
    %29 = vector.extract_strided_slice %27 {offsets = [0, 4], sizes = [8, 1], strides = [1, 1]} : vector<8x256xf32> to vector<8x1xf32>
    %30 = vector.extract_strided_slice %27 {offsets = [0, 8], sizes = [8, 1], strides = [1, 1]} : vector<8x256xf32> to vector<8x1xf32>
    %31 = vector.extract_strided_slice %27 {offsets = [0, 12], sizes = [8, 1], strides = [1, 1]} : vector<8x256xf32> to vector<8x1xf32>
    %32 = vector.extract_strided_slice %27 {offsets = [0, 64], sizes = [8, 1], strides = [1, 1]} : vector<8x256xf32> to vector<8x1xf32>
    %33 = vector.extract_strided_slice %27 {offsets = [0, 68], sizes = [8, 1], strides = [1, 1]} : vector<8x256xf32> to vector<8x1xf32>
    %34 = vector.extract_strided_slice %27 {offsets = [0, 72], sizes = [8, 1], strides = [1, 1]} : vector<8x256xf32> to vector<8x1xf32>
    %35 = vector.extract_strided_slice %27 {offsets = [0, 76], sizes = [8, 1], strides = [1, 1]} : vector<8x256xf32> to vector<8x1xf32>
    %36 = vector.extract_strided_slice %27 {offsets = [0, 128], sizes = [8, 1], strides = [1, 1]} : vector<8x256xf32> to vector<8x1xf32>
    %37 = vector.extract_strided_slice %27 {offsets = [0, 132], sizes = [8, 1], strides = [1, 1]} : vector<8x256xf32> to vector<8x1xf32>
    %38 = vector.extract_strided_slice %27 {offsets = [0, 136], sizes = [8, 1], strides = [1, 1]} : vector<8x256xf32> to vector<8x1xf32>
    %39 = vector.extract_strided_slice %27 {offsets = [0, 140], sizes = [8, 1], strides = [1, 1]} : vector<8x256xf32> to vector<8x1xf32>
    %40 = vector.extract_strided_slice %27 {offsets = [0, 192], sizes = [8, 1], strides = [1, 1]} : vector<8x256xf32> to vector<8x1xf32>
    %41 = vector.extract_strided_slice %27 {offsets = [0, 196], sizes = [8, 1], strides = [1, 1]} : vector<8x256xf32> to vector<8x1xf32>
    %42 = vector.extract_strided_slice %27 {offsets = [0, 200], sizes = [8, 1], strides = [1, 1]} : vector<8x256xf32> to vector<8x1xf32>
    %43 = vector.extract_strided_slice %27 {offsets = [0, 204], sizes = [8, 1], strides = [1, 1]} : vector<8x256xf32> to vector<8x1xf32>
    %44 = tpu.concatenate %28, %29, %30, %31, %32, %33, %34, %35, %36, %37, %38, %39, %40, %41, %42, %43 in 1 : vector<8x1xf32>, vector<8x1xf32>, vector<8x1xf32>, vector<8x1xf32>, vector<8x1xf32>, vector<8x1xf32>, vector<8x1xf32>, vector<8x1xf32>, vector<8x1xf32>, vector<8x1xf32>, vector<8x1xf32>, vector<8x1xf32>, vector<8x1xf32>, vector<8x1xf32>, vector<8x1xf32>, vector<8x1xf32> -> vector<8x16xf32>
    %45 = vector.extract_strided_slice %44 {offsets = [0, 0], sizes = [1, 16], strides = [1, 1]} : vector<8x16xf32> to vector<1x16xf32>
    %46 = vector.extract_strided_slice %44 {offsets = [1, 0], sizes = [1, 16], strides = [1, 1]} : vector<8x16xf32> to vector<1x16xf32>
    %47 = vector.extract_strided_slice %44 {offsets = [2, 0], sizes = [1, 16], strides = [1, 1]} : vector<8x16xf32> to vector<1x16xf32>
    %48 = vector.extract_strided_slice %44 {offsets = [3, 0], sizes = [1, 16], strides = [1, 1]} : vector<8x16xf32> to vector<1x16xf32>
    %49 = vector.extract_strided_slice %44 {offsets = [4, 0], sizes = [1, 16], strides = [1, 1]} : vector<8x16xf32> to vector<1x16xf32>
    %50 = vector.extract_strided_slice %44 {offsets = [5, 0], sizes = [1, 16], strides = [1, 1]} : vector<8x16xf32> to vector<1x16xf32>
    %51 = vector.extract_strided_slice %44 {offsets = [6, 0], sizes = [1, 16], strides = [1, 1]} : vector<8x16xf32> to vector<1x16xf32>
    %52 = vector.extract_strided_slice %44 {offsets = [7, 0], sizes = [1, 16], strides = [1, 1]} : vector<8x16xf32> to vector<1x16xf32>
    %53 = tpu.concatenate %45, %46, %47, %48, %49, %50, %51, %52 in 1 : vector<1x16xf32>, vector<1x16xf32>, vector<1x16xf32>, vector<1x16xf32>, vector<1x16xf32>, vector<1x16xf32>, vector<1x16xf32>, vector<1x16xf32> -> vector<1x128xf32>
    %c0_6 = arith.constant 0 : index
    %54 = arith.index_cast %c0_i32 : i32 to index
    %c0_7 = arith.constant 0 : index
    %55 = vector.load %arg3[%c0_6, %54, %c0_7] : memref<1x1x128xf32, #tpu.memory_space<vmem>>, vector<1x1x128xf32>
    %56 = vector.shape_cast %55 : vector<1x1x128xf32> to vector<1x128xf32>
    %57 = vector.shape_cast %53 : vector<1x128xf32> to vector<1x1x128xf32>
    tpu.vector_store %arg3[%c0_6, %54, %c0_7], %57 {strides = array<i32>} : memref<1x1x128xf32, #tpu.memory_space<vmem>>, vector<1x1x128xf32>,
    %c1_i32 = arith.constant 1 : i32
    return
  }
  func.func @transform_0(%arg0: i32) -> i32 {
    %c0_i32 = arith.constant 0 : i32
    %c0_i32_0 = arith.constant 0 : i32
    return %c0_i32 : i32
  }
  func.func @transform_1(%arg0: i32) -> (i32, i32) {
    %c0_i32 = arith.constant 0 : i32
    %c0_i32_0 = arith.constant 0 : i32
    return %arg0, %c0_i32 : i32, i32
  }
  func.func @transform_2(%arg0: i32) -> (i32, i32, i32) {
    %c0_i32 = arith.constant 0 : i32
    %c0_i32_0 = arith.constant 0 : i32
    %c0_i32_1 = arith.constant 0 : i32
    return %arg0, %c0_i32, %c0_i32_0 : i32, i32, i32
  }
}

</mosaic_0001>

<bundles_post_ra>
// kernel: sdn_pool.1
= control target key start
LH: loop header
LB: loop body
LE: loop exit
PB: predicated region body
PF: predicated region fallthrough
CT: control target
= control target key end

     0   :  { %s240_s11 = smov 127   ;;  %v24_v2 = vlaneseq  ;;  %s241_s14 = smov 126   ;;  %vm139_vm4 = vcmask 7168   ;;  %vm141_vm5 = vcmask 15360   ;;  %vm143_vm6 = vcmask 23552   ;;  %s320_s1 = inlined_call_operand.vmem [shape: f32[8,256], index: 1, kind: input, shape index: {}]   ;;  %s321_s0 = inlined_call_operand.<no memory space> [shape: f32[1], index: 0, kind: input, shape index: {}]   ;;  %s322_s2 = inlined_call_operand.vmem [shape: f32[1,1,128], index: 2, kind: output, shape index: {}]  }
   0x1   :  { %v18_v0 = vld [vmem:[%s320_s1] sm:$0xff]  ;;  %v19_v1 = vld [vmem:[%s320_s1 + $0x8] sm:$0xff]  ;;  %s242_s1 = smov 112   ;;  %s243_s15 = smov 96   ;;  %v87_v42 = vstv %s321_s0  ;;  %vm145_vm7 = vcmask 31744   ;;  %vm147_vm8 = vcmask 39936  }
   0x2   :  { %20 = vrot.lane.b32.xlu0 %v18_v0, %s240_s11  ;;  %v286_v4 = vand.u32 127, %v24_v2  ;;  %s13_s18 = ssub.f32 1.0, %s321_s0  ;;  %s244_s22 = smov 119   ;;  %vm149_vm9 = vcmask 48128   ;;  %vm151_vm10 = vcmask 56320   ;;  %vm153_vm11 = vcmask 64512  }
   0x3   :  { %s245_s23 = smov 122   ;;  %s246_s24 = smov 125   ;;  %vm155_vm12 = vcmask 72704   ;;  %vm157_vm13 = vcmask 80896   ;;  %vm159_vm14 = vcmask 89088   ;;  %vm161_vm15 = vcmask 97280  }
   0x4   :  { %vm26_vm0 = vcmp.lt.s32.totalorder %v286_v4, 127  ;;  %vm35_vm1 = vcmp.lt.s32.totalorder %v286_v4, 126  ;;  %vm44_vm2 = vcmp.lt.s32.totalorder %v286_v4, 112  ;;  %vm53_vm3 = vcmp.lt.s32.totalorder %v286_v4, 96  ;;  %s14_s19 = smul.f32 0.0625, %s13_s18  ;;  %s247_s0 = smov 62  }
   0x5   :  { %s248_s25 = smov 65   ;;  %s249_s26 = smov 68  }
   0x6   :  { %v84_v44 = vstv %s14_s19  ;;  %s250_s27 = smov 5   ;;  %s251_s28 = smov 8  }
   0x7   :  { %s252_s29 = smov 59   ;;  %s253_s30 = smov 76  }
   0x8   :  { %s254_s3 = smov 2   ;;  %s255_s4 = smov 67  }
   0x9   :  { %s256_s5 = smov 70   ;;  %s257_s6 = smov 73  }
   0xa   :  { %22 = vrot.lane.b32.xlu0 %v19_v1, %s240_s11  ;;  %s258_s7 = smov 48   ;;  %s259_s8 = smov 32  }
   0xb   :  { %s260_s9 = smov 16   ;;  %s261_s10 = smov 80  }
  0x74   :  { %v21_v3 = vpop.permute.xlu0 %20 }
  0x7c   :  { %v23_v5 = vpop.permute.xlu0 %22 }
  0x7d   :  { %v27_v6 = vsel %vm26_vm0, %v21_v3, %v23_v5  ;;  %v28_v9 = vsel %vm26_vm0, %v23_v5, %v21_v3  ;;  %vm163_vm0 = vcmask 105472  }
  0x7e   :  { %v58_v7 = vadd.f32 %v27_v6, %v18_v0  ;;  %v29_v8 = vmax.f32 %v18_v0, %v27_v6  ;;  %v30_v10 = vmax.f32 %v19_v1, %v28_v9  ;;  %v59_v11 = vadd.f32 %v28_v9, %v19_v1 }
  0x80   :  { %60 = vrot.lane.b32.xlu2 %v58_v7, %s241_s14  ;;  %31 = vrot.lane.b32.xlu1 %v29_v8, %s241_s14 }
  0x88   :  { %62 = vrot.lane.b32.xlu2 %v59_v11, %s241_s14  ;;  %33 = vrot.lane.b32.xlu1 %v30_v10, %s241_s14 }
  0xda   :  { %v61_v12 = vpop.permute.xlu2 %60 }
  0xe2   :  { %v63_v13 = vpop.permute.xlu2 %62 }
  0xe3   :  { %v64_v14 = vsel %vm35_vm1, %v61_v12, %v63_v13  ;;  %v65_v22 = vsel %vm35_vm1, %v63_v13, %v61_v12 }
  0xe4   :  { %v66_v15 = vadd.f32 %v64_v14, %v58_v7  ;;  %v67_v23 = vadd.f32 %v65_v22, %v59_v11 }
  0xe6   :  { %68 = vrot.lane.b32.xlu2 %v66_v15, %s242_s1 }
  0xf2   :  { %v32_v16 = vpop.permute.xlu1 %31 }
  0xfa   :  { %v34_v17 = vpop.permute.xlu1 %33 }
  0xfb   :  { %v36_v18 = vsel %vm35_vm1, %v32_v16, %v34_v17  ;;  %v37_v19 = vsel %vm35_vm1, %v34_v17, %v32_v16  ;;  %vm165_vm1 = vcmask 113664  }
  0xfc   :  { %v38_v20 = vmax.f32 %v29_v8, %v36_v18  ;;  %v39_v21 = vmax.f32 %v30_v10, %v37_v19 }
  0xfe   :  { %42 = vrot.lane.b32.xlu1 %v39_v21, %s242_s1  ;;  %40 = vrot.lane.b32.xlu0 %v38_v20, %s242_s1 }
 0x106   :  { %70 = vrot.lane.b32.xlu0 %v67_v23, %s242_s1 }
 0x140   :  { %v69_v30 = vpop.permute.xlu2 %68 }
 0x170   :  { %v43_v24 = vpop.permute.xlu1 %42  ;;  %v41_v25 = vpop.permute.xlu0 %40 }
 0x171   :  { %v45_v26 = vsel %vm44_vm2, %v41_v25, %v43_v24  ;;  %v46_v27 = vsel %vm44_vm2, %v43_v24, %v41_v25 }
 0x172   :  { %v47_v28 = vmax.f32 %v38_v20, %v45_v26  ;;  %v48_v29 = vmax.f32 %v39_v21, %v46_v27 }
 0x174   :  { %51 = vrot.lane.b32.xlu2 %v48_v29, %s243_s15  ;;  %49 = vrot.lane.b32.xlu1 %v47_v28, %s243_s15 }
 0x178   :  { %v71_v31 = vpop.permute.xlu0 %70 }
 0x179   :  { %v72_v32 = vsel %vm44_vm2, %v69_v30, %v71_v31  ;;  %v73_v33 = vsel %vm44_vm2, %v71_v31, %v69_v30  ;;  %vm167_vm2 = vcmask 121856  }
 0x17a   :  { %v74_v34 = vadd.f32 %v72_v32, %v66_v15  ;;  %v75_v35 = vadd.f32 %v73_v33, %v67_v23 }
 0x17c   :  { %78 = vrot.lane.b32.xlu1 %v75_v35, %s243_s15  ;;  %76 = vrot.lane.b32.xlu0 %v74_v34, %s243_s15 }
 0x1ce   :  { %v52_v37 = vpop.permute.xlu2 %51 }
 0x1e6   :  { %v50_v36 = vpop.permute.xlu1 %49 }
 0x1e7   :  { %v54_v38 = vsel %vm53_vm3, %v50_v36, %v52_v37  ;;  %v55_v50 = vsel %vm53_vm3, %v52_v37, %v50_v36 }
 0x1e8   :  { %v56_v39 = vmax.f32 %v47_v28, %v54_v38  ;;  %v57_v52 = vmax.f32 %v48_v29, %v55_v50 }
 0x1ea   :  { %v88_v46 = vmul.f32 %v87_v42, %v56_v39  ;;  %v89_v54 = vmul.f32 %v87_v42, %v57_v52 }
 0x1ee   :  { %v79_v40 = vpop.permute.xlu1 %78  ;;  %v77_v41 = vpop.permute.xlu0 %76 }
 0x1ef   :  { %v80_v43 = vsel %vm53_vm3, %v77_v41, %v79_v40  ;;  %v81_v49 = vsel %vm53_vm3, %v79_v40, %v77_v41  ;;  %vm198_vm3 = vcmask 130048  }
 0x1f0   :  { %v82_v45 = vadd.f32 %v80_v43, %v74_v34  ;;  %v83_v51 = vadd.f32 %v81_v49, %v75_v35 }
 0x1f2   :  { %v85_v47 = vmul.f32 %v84_v44, %v82_v45  ;;  %v86_v53 = vmul.f32 %v84_v44, %v83_v51 }
 0x1f4   :  { %v90_v48 = vadd.f32 %v88_v46, %v85_v47  ;;  %v91_v55 = vadd.f32 %v89_v54, %v86_v53 }
 0x1f6   :  { %99 = vrot.lane.b32.xlu1 %v90_v48, %s244_s22  ;;  %96 = vrot.lane.b32.xlu0 %v90_v48, %s245_s23 }
 0x1f7   :  { %93 = vrot.lane.b32.xlu2 %v90_v48, %s246_s24 }
 0x1fe   :  { %108 = vrot.lane.b32.xlu1 %v90_v48, %s247_s0  ;;  %105 = vrot.lane.b32.xlu0 %v90_v48, %s248_s25 }
 0x1ff   :  { %102 = vrot.lane.b32.xlu2 %v90_v48, %s249_s26 }
 0x206   :  { %118 = vrot.lane.b32.xlu1 %v91_v55, %s250_s27  ;;  %115 = vrot.lane.b32.xlu0 %v91_v55, %s251_s28 }
 0x207   :  { %111 = vrot.lane.b32.xlu2 %v90_v48, %s252_s29 }
 0x20e   :  { %127 = vrot.lane.b32.xlu1 %v91_v55, %s253_s30  ;;  %124 = vrot.lane.b32.xlu0 %v91_v55, %s240_s11  ;;  %s262_s11 = smov 64  }
 0x20f   :  { %121 = vrot.lane.b32.xlu2 %v91_v55, %s254_s3 }
 0x216   :  { %136 = vrot.lane.b32.xlu1 %v91_v55, %s255_s4  ;;  %133 = vrot.lane.b32.xlu0 %v91_v55, %s256_s5 }
 0x217   :  { %130 = vrot.lane.b32.xlu2 %v91_v55, %s257_s6 }
 0x251   :  { %v94_v56 = vpop.permute.xlu2 %93 }
 0x252   :  { %v140_v60 = vsel %vm139_vm4, %v90_v48, %v94_v56  ;;  %vm200_vm4 = vcmask 261120  }
 0x259   :  { %v103_v59 = vpop.permute.xlu2 %102 }
 0x261   :  { %v112_v1 = vpop.permute.xlu2 %111 }
 0x268   :  { %v100_v57 = vpop.permute.xlu1 %99  ;;  %v97_v58 = vpop.permute.xlu0 %96 }
 0x269   :  { %v142_v61 = vsel %vm141_vm5, %v140_v60, %v97_v58  ;;  %v122_v9 = vpop.permute.xlu2 %121  ;;  %vm202_vm5 = vcmask 392192  }
 0x26a   :  { %v144_v62 = vsel %vm143_vm6, %v142_v61, %v100_v57  ;;  %vm204_vm6 = vcmask 523264  }
 0x26b   :  { %v146_v2 = vsel %vm145_vm7, %v144_v62, %v103_v59  ;;  %vm206_vm7 = vcmask 654336  }
 0x270   :  { %v109_v63 = vpop.permute.xlu1 %108  ;;  %v106_v0 = vpop.permute.xlu0 %105 }
 0x271   :  { %v148_v3 = vsel %vm147_vm8, %v146_v2, %v106_v0  ;;  %v131_v16 = vpop.permute.xlu2 %130  ;;  %vm208_vm8 = vcmask 785408  }
 0x272   :  { %v150_v4 = vsel %vm149_vm9, %v148_v3, %v109_v63  ;;  %vm210_vm9 = vcmask 916480  }
 0x273   :  { %v152_v7 = vsel %vm151_vm10, %v150_v4, %v112_v1 }
 0x278   :  { %v119_v5 = vpop.permute.xlu1 %118  ;;  %v116_v6 = vpop.permute.xlu0 %115 }
 0x279   :  { %v154_v8 = vsel %vm153_vm11, %v152_v7, %v116_v6 }
 0x27a   :  { %v156_v10 = vsel %vm155_vm12, %v154_v8, %v119_v5 }
 0x27b   :  { %v158_v13 = vsel %vm157_vm13, %v156_v10, %v122_v9 }
 0x280   :  { %v128_v11 = vpop.permute.xlu1 %127  ;;  %v125_v12 = vpop.permute.xlu0 %124 }
 0x281   :  { %v160_v14 = vsel %vm159_vm14, %v158_v13, %v125_v12 }
 0x282   :  { %v162_v15 = vsel %vm161_vm15, %v160_v14, %v128_v11 }
 0x283   :  { %v164_v19 = vsel %vm163_vm0, %v162_v15, %v131_v16 }
 0x288   :  { %v137_v17 = vpop.permute.xlu1 %136  ;;  %v134_v18 = vpop.permute.xlu0 %133 }
 0x289   :  { %v166_v20 = vsel %vm165_vm1, %v164_v19, %v134_v18 }
 0x28a   :  { %v168_v21 = vsel %vm167_vm2, %v166_v20, %v137_v17 }
 0x28b   :  { %v178_v22 = vrot.slane %v168_v21, 3  ;;  %v174_v23 = vrot.slane %v168_v21, 2  ;;  %v170_v24 = vrot.slane %v168_v21, 1  ;;  %v190_v25 = vrot.slane %v168_v21, 6 }
 0x28c   :  { %v186_v26 = vrot.slane %v168_v21, 5  ;;  %v182_v27 = vrot.slane %v168_v21, 4  ;;  %v194_v28 = vrot.slane %v168_v21, 7 }
 0x28d   :  { %179 = vrot.lane.b32.xlu1 %v178_v22, %s258_s7  ;;  %175 = vrot.lane.b32.xlu0 %v174_v23, %s259_s8 }
 0x28e   :  { %171 = vrot.lane.b32.xlu2 %v170_v24, %s260_s9 }
 0x295   :  { %191 = vrot.lane.b32.xlu1 %v190_v25, %s243_s15  ;;  %187 = vrot.lane.b32.xlu0 %v186_v26, %s261_s10 }
 0x296   :  { %183 = vrot.lane.b32.xlu2 %v182_v27, %s262_s11 }
 0x29e   :  { %195 = vrot.lane.b32.xlu2 %v194_v28, %s242_s1 }
 0x2e8   :  { %v172_v29 = vpop.permute.xlu2 %171 }
 0x2e9   :  { %v199_v33 = vsel %vm198_vm3, %v168_v21, %v172_v29 }
 0x2f0   :  { %v184_v30 = vpop.permute.xlu2 %183 }
 0x2f8   :  { %v196_v40 = vpop.permute.xlu2 %195 }
 0x2ff   :  { %v180_v31 = vpop.permute.xlu1 %179  ;;  %v176_v32 = vpop.permute.xlu0 %175 }
 0x300   :  { %v201_v34 = vsel %vm200_vm4, %v199_v33, %v176_v32 }
 0x301   :  { %v203_v35 = vsel %vm202_vm5, %v201_v34, %v180_v31 }
 0x302   :  { %v205_v38 = vsel %vm204_vm6, %v203_v35, %v184_v30 }
 0x307   :  { %v192_v36 = vpop.permute.xlu1 %191  ;;  %v188_v37 = vpop.permute.xlu0 %187 }
 0x308   :  { %v207_v39 = vsel %vm206_vm7, %v205_v38, %v188_v37 }
 0x309   :  { %v209_v41 = vsel %vm208_vm8, %v207_v39, %v192_v36 }
 0x30a   :  { %v211_v42 = vsel %vm210_vm9, %v209_v41, %v196_v40 }
 0x30b   :  { %212 = vst [vmem:[%s322_s2] sm:$0x1] %v211_v42 }

</bundles_post_ra>
